<compile_context>
chip_gen: v5e
topology: v5e:2x2
jax: 0.10.0
libtpu: 0.0.40
codegen_flags: <defaults>
</compile_context>

<pallas_src>
import functools

import jax
import jax.numpy as jnp
from jax.experimental import pallas as pl
from jax.experimental.pallas import tpu as pltpu


def _ce_label_smooth_kernel(x_ref, t_ref, o_ref, *, epsilon: float,
                            n_total: int, block_rows: int,
                            needs_row_mask: bool):
    i = pl.program_id(0)

    x = x_ref[...].astype(jnp.float32)          # (TN, C) logits (f32 compute)
    t = t_ref[...]                              # (TN, 1) int32 targets
    tn, c = x.shape

    # Trace-time constants.
    a = (epsilon / (c - 1.0)) if c > 1 else 0.0   # off-target weight
    on_target = 1.0 - epsilon                     # target weight

    # Numerically stable log-softmax pieces; row reductions hit the XLU,
    # exp/log hit the EUP (both off the VALU critical path).
    m = jnp.max(x, axis=-1, keepdims=True)                        # (TN, 1)
    sh = x - m                                                    # (TN, C)
    lse = jnp.log(jnp.sum(jnp.exp(sh), axis=-1, keepdims=True))   # (TN, 1)

    # Smoothed weights built in-register: w = a everywhere, 1-eps on target.
    # NOTE: out-of-range targets behave like weight-a rows (PyTorch scatter_
    # would error instead).
    col = jax.lax.broadcasted_iota(jnp.int32, (tn, c), 1)
    w = jnp.where(col == t, on_target, a)                         # (TN, C)
    wsum = jnp.sum(w * sh, axis=-1, keepdims=True)                # (TN, 1)

    per_row = lse - wsum                                          # (TN, 1)

    if needs_row_mask:
        # Zero out padded rows of the last (partial) tile before reducing.
        row = jax.lax.broadcasted_iota(jnp.int32, (tn, 1), 0) + i * block_rows
        per_row = jnp.where(row < n_total, per_row, 0.0)

    # One f32 partial per tile, broadcast to a full (8, 128)-aligned block so
    # the store is a plain unmasked vst; the wrapper reads element [0, 0].
    partial = jnp.sum(per_row)
    o_ref[...] = jnp.full(o_ref.shape, partial, dtype=o_ref.dtype)


def _choose_block_rows(n: int, c: int, itemsize: int) -> int:
    # Size the double-buffered x tile for ~12 MiB of VMEM (f32 accounting for
    # in-kernel intermediates) so the kernel fits comfortably on all
    # generations (v7x: 64 MiB/TC, v5e small default scoped limit); cap at
    # 1024 rows (diminishing pipelining returns beyond ~512).
    budget = 12 * 1024 * 1024
    per_row = max(1, 2 * c * max(itemsize, 4))
    tn = budget // per_row
    tn = max(8, min(1024, (tn // 8) * 8))
    return int(tn)


def ce_label_smooth_loss(x, target, *, epsilon: float = 0.14, block_rows=None):
    """x: (N, C) float logits; target: (N,) int labels. Returns scalar f32."""
    n, c = x.shape
    t2d = target.astype(jnp.int32).reshape(n, 1)

    if block_rows is None:
        block_rows = _choose_block_rows(n, c, x.dtype.itemsize)
    if n <= block_rows:
        block_rows = n                      # single tile == full array
    else:
        block_rows = max(8, (block_rows // 8) * 8)  # sublane-aligned tiles

    grid_n = pl.cdiv(n, block_rows)
    needs_row_mask = (grid_n * block_rows != n)

    kernel = functools.partial(
        _ce_label_smooth_kernel,
        epsilon=float(epsilon),
        n_total=n,
        block_rows=block_rows,
        needs_row_mask=needs_row_mask,
    )

    itemsize = x.dtype.itemsize
    cost = pl.CostEstimate(
        flops=6 * n * c,
        transcendentals=n * c + n,
        bytes_accessed=n * c * itemsize + n * 4 + grid_n * 8 * 128 * 4,
    )

    partials = pl.pallas_call(
        kernel,
        out_shape=jax.ShapeDtypeStruct((grid_n, 8, 128), jnp.float32),
        grid_spec=pltpu.PrefetchScalarGridSpec(
            num_scalar_prefetch=0,
            grid=(grid_n,),
            in_specs=[
                pl.BlockSpec((block_rows, c), lambda i: (i, 0)),   # logits tile
                pl.BlockSpec((block_rows, 1), lambda i: (i, 0)),   # targets tile
            ],
            out_specs=pl.BlockSpec((1, 8, 128), lambda i: (i, 0, 0)),
        ),
        compiler_params=pltpu.CompilerParams(
            dimension_semantics=("parallel",),   # independent per-tile partials
            vmem_limit_bytes=32 * 1024 * 1024,
        ),
        cost_estimate=cost,
    )(x, t2d)

    # Tiny final reduction over per-tile partials + the mean's 1/N scale.
    return (jnp.sum(partials[:, 0, 0]) * (1.0 / n)).astype(jnp.float32)


def _ref_loss(x, target, epsilon=0.14):
    # Pure-JAX reference mirroring the PyTorch module.
    log_prob = jax.nn.log_softmax(x.astype(jnp.float32), axis=-1)
    c = x.shape[-1]
    weight = jnp.full_like(log_prob, epsilon / (c - 1.0))
    weight = weight.at[jnp.arange(x.shape[0]), target].set(1.0 - epsilon)
    return jnp.mean(jnp.sum(-weight * log_prob, axis=-1))


if __name__ == "__main__":
    key = jax.random.PRNGKey(0)
    k_x, k_t = jax.random.split(key)

    # Primary small case matching the module defaults (classes=4).
    N, C = 8, 4
    x = jax.random.normal(k_x, (N, C), dtype=jnp.float32)
    target = jax.random.randint(k_t, (N,), 0, C, dtype=jnp.int32)

    loss = ce_label_smooth_loss(x, target, epsilon=0.14)
    jax.block_until_ready(loss)
    ref = _ref_loss(x, target, epsilon=0.14)
    assert jnp.allclose(loss, ref, atol=1e-5, rtol=1e-5), (loss, ref)

    # Tiled case: multiple grid steps, block exactly divides N.
    k_x2, k_t2 = jax.random.split(jax.random.PRNGKey(1))
    N2, C2 = 2048, 512
    x2 = jax.random.normal(k_x2, (N2, C2), dtype=jnp.float32)
    t2 = jax.random.randint(k_t2, (N2,), 0, C2, dtype=jnp.int32)
    loss2 = ce_label_smooth_loss(x2, t2, epsilon=0.14, block_rows=256)
    jax.block_until_ready(loss2)
    ref2 = _ref_loss(x2, t2, epsilon=0.14)
    assert jnp.allclose(loss2, ref2, atol=1e-3, rtol=1e-4), (loss2, ref2)

    # Tiled case with a padded (partial) last tile: exercises the row mask.
    k_x3, k_t3 = jax.random.split(jax.random.PRNGKey(2))
    N3, C3 = 300, 32
    x3 = jax.random.normal(k_x3, (N3, C3), dtype=jnp.float32)
    t3 = jax.random.randint(k_t3, (N3,), 0, C3, dtype=jnp.int32)
    loss3 = ce_label_smooth_loss(x3, t3, epsilon=0.14, block_rows=128)
    jax.block_until_ready(loss3)
    ref3 = _ref_loss(x3, t3, epsilon=0.14)
    assert jnp.allclose(loss3, ref3, atol=1e-4, rtol=1e-5), (loss3, ref3)

    print("KERNEL_OK")
</pallas_src>

<mosaic_0001>
module attributes {stable_mosaic.version = 11 : i64} {
  func.func @_ce_label_smooth_kernel(%arg0: i32, %arg1: memref<8x4xf32, #tpu.memory_space<vmem>>, %arg2: memref<8x1xi32, #tpu.memory_space<vmem>>, %arg3: memref<1x8x128xf32, #tpu.memory_space<vmem>>) attributes {dimension_semantics = [#tpu.dimension_semantics<parallel>], iteration_bounds = array<i64: 1>, scalar_prefetch = 0 : i64, scratch_operands = 0 : i64, tpu.core_type = #tpu.core_type<tc>, window_params = [{transform_indices = @transform_0, window_bounds = array<i64: 8, 4>}, {transform_indices = @transform_1, window_bounds = array<i64: 8, 1>}, {transform_indices = @transform_2, window_bounds = array<i64: 1, 8, 128>}]} {
    %c0 = arith.constant 0 : index
    %c0_0 = arith.constant 0 : index
    %0 = vector.load %arg1[%c0, %c0_0] : memref<8x4xf32, #tpu.memory_space<vmem>>, vector<8x4xf32>
    %c0_1 = arith.constant 0 : index
    %c0_2 = arith.constant 0 : index
    %1 = vector.load %arg2[%c0_1, %c0_2] : memref<8x1xi32, #tpu.memory_space<vmem>>, vector<8x1xi32>
    %cst = arith.constant dense<0xFF800000> : vector<8xf32>
    %2 = vector.multi_reduction <maximumf>, %0, %cst [1] : vector<8x4xf32> to vector<8xf32>
    %3 = vector.shape_cast %2 : vector<8xf32> to vector<8x1xf32>
    %4 = vector.broadcast %3 : vector<8x1xf32> to vector<8x4xf32>
    %5 = arith.subf %0, %4 : vector<8x4xf32>
    %6 = math.exp %5 : vector<8x4xf32>
    %cst_3 = arith.constant dense<0.000000e+00> : vector<8xf32>
    %7 = vector.multi_reduction <add>, %6, %cst_3 [1] : vector<8x4xf32> to vector<8xf32>
    %8 = vector.shape_cast %7 : vector<8xf32> to vector<8x1xf32>
    %9 = math.log %8 : vector<8x1xf32>
    %10 = tpu.iota {dimensions = array<i32: 1>} : vector<8x4xi32>
    %11 = vector.broadcast %1 : vector<8x1xi32> to vector<8x4xi32>
    %12 = arith.cmpi eq, %10, %11 : vector<8x4xi32>
    %cst_4 = arith.constant 8.600000e-01 : f32
    %cst_5 = arith.constant 0.0466666669 : f32
    %13 = vector.broadcast %cst_4 : f32 to vector<8x4xf32>
    %14 = vector.broadcast %cst_5 : f32 to vector<8x4xf32>
    %15 = arith.select %12, %13, %14 : vector<8x4xi1>, vector<8x4xf32>
    %16 = arith.mulf %15, %5 : vector<8x4xf32>
    %cst_6 = arith.constant dense<0.000000e+00> : vector<8xf32>
    %17 = vector.multi_reduction <add>, %16, %cst_6 [1] : vector<8x4xf32> to vector<8xf32>
    %18 = vector.shape_cast %17 : vector<8xf32> to vector<8x1xf32>
    %19 = arith.subf %9, %18 : vector<8x1xf32>
    %20 = vector.shape_cast %19 : vector<8x1xf32> to vector<1x8x1xf32>
    %cst_7 = arith.constant dense<0.000000e+00> : vector<1xf32>
    %21 = vector.multi_reduction <add>, %20, %cst_7 [1, 2] : vector<1x8x1xf32> to vector<1xf32>
    %22 = vector.shape_cast %21 : vector<1xf32> to vector<1x1x1xf32>
    %23 = vector.extract %22[0, 0, 0] : f32 from vector<1x1x1xf32>
    %24 = vector.broadcast %23 : f32 to vector<1x8x128xf32>
    %c0_8 = arith.constant 0 : index
    %c0_9 = arith.constant 0 : index
    %c0_10 = arith.constant 0 : index
    %25 = vector.load %arg3[%c0_8, %c0_9, %c0_10] : memref<1x8x128xf32, #tpu.memory_space<vmem>>, vector<1x8x128xf32>
    tpu.vector_store %arg3[%c0_8, %c0_9, %c0_10], %24 {strides = array<i32>} : memref<1x8x128xf32, #tpu.memory_space<vmem>>, vector<1x8x128xf32>,
    return
  }
  func.func @transform_0(%arg0: i32) -> (i32, i32) {
    %c0_i32 = arith.constant 0 : i32
    %c0_i32_0 = arith.constant 0 : i32
    return %arg0, %c0_i32 : i32, i32
  }
  func.func @transform_1(%arg0: i32) -> (i32, i32) {
    %c0_i32 = arith.constant 0 : i32
    %c0_i32_0 = arith.constant 0 : i32
    return %arg0, %c0_i32 : i32, i32
  }
  func.func @transform_2(%arg0: i32) -> (i32, i32, i32) {
    %c0_i32 = arith.constant 0 : i32
    %c0_i32_0 = arith.constant 0 : i32
    %c0_i32_1 = arith.constant 0 : i32
    return %arg0, %c0_i32, %c0_i32_0 : i32, i32, i32
  }
}

</mosaic_0001>

<bundles_post_ra>
// kernel: tpu_custom_call.1
= control target key start
LH: loop header
LB: loop body
LE: loop exit
PB: predicated region body
PF: predicated region fallthrough
CT: control target
= control target key end

     0   :  { %vm14_vm0 = vcmask 31744   ;;  %s133_s0 = inlined_call_operand.vmem [shape: f32[8,4], index: 0, kind: input, shape index: {}]   ;;  %s134_s1 = inlined_call_operand.vmem [shape: s32[8,1], index: 1, kind: input, shape index: {}]   ;;  %s135_s2 = inlined_call_operand.hbm [shape: f32[1,8,128], index: 2, kind: output, shape index: {}]  }
   0x1   :  { %v12_v0 = vld [vmem:[%s133_s0] sm:$0xff] }
   0x2   :  { %7 = vsyncpa [#allocation3], 0  ;;  %v15_v1 = vsel %vm14_vm0, %v12_v0, -inf  ;;  %v103_v2 = vmov 0   ;;  %v13_v3 = vld [vmem:[%s134_s1] sm:$0xff]  ;;  %v26_v9 = vlaneseq  ;;  %vm38_vm2 = vcmask 7168  }
   0x3   :  { %72 = vset.pattern.permute.xlu0 %v103_v2  ;;  %v104_v12 = vmov 0.046666667   ;;  %s105_s0 = smov [#allocation2]   ;;  %s58_s15 = sshll.u32 %s135_s2, 4  ;;  %s59_s15 = int_to_ptr.hbm [resolvable:$true] %s58_s15 }
   0x4   :  { %16 = vmax.xlane.f32.xlu0 %v15_v1  ;;  %v27_v10 = vand.u32 127, %v26_v9  ;;  %s56_s1 = sshll.u32 %s105_s0, 4  ;;  %s57_s1 = int_to_ptr.vmem [resolvable:$true] %s56_s1 }
  0x18   :  { %29 = vperm.xlu0 %72, %v13_v3  }
  0x77   :  { %v17_v4 = vpop.xlane.xlu0 %16 }
  0x78   :  { %v18_v5 = vsub.f32 %v12_v0, %v17_v4 }
  0x7a   :  { %v19_v6 = vmul.f32 1.442695, %v18_v5 }
  0x7c   :  { %73 = vpow2.f32 %v19_v6 }
  0x82   :  { %v74_v7 = vpop.eup %73 }
  0x83   :  { %v21_v8 = vsel %vm14_vm0, %v74_v7, 0.0 }
  0x84   :  { %22 = vadd.xlane.f32.xlu1 %v21_v8 }
  0x8a   :  { %v30_v11 = vpop.permute.xlu0 %29 }
  0x8b   :  { %vm31_vm1 = vcmp.eq.s32.totalorder %v27_v10, %v30_v11 }
  0x8c   :  { %v32_v13 = vsel %vm31_vm1, 0.86, %v104_v12 }
  0x8d   :  { %v33_v14 = vmul.f32 %v32_v13, %v18_v5 }
  0x8f   :  { %v34_v15 = vsel %vm14_vm0, %v33_v14, 0.0 }
  0x90   :  { %35 = vadd.xlane.f32.xlu1 %v34_v15 }
  0xf7   :  { %v23_v16 = vpop.xlane.xlu1 %22 }
  0xf8   :  { %75 = vlog2.f32 %v23_v16 }
  0xfe   :  { %v76_v17 = vpop.eup %75 }
  0xff   :  { %v25_v18 = vmul.f32 0.6931472, %v76_v17 }
 0x103   :  { %v36_v19 = vpop.xlane.xlu1 %35 }
 0x104   :  { %v37_v20 = vsub.f32 %v25_v18, %v36_v19 }
 0x106   :  { %v39_v21 = vsel %vm38_vm2, %v37_v20, 0.0 }
 0x107   :  { %40 = vadd.xlane.f32.xlu2 %v39_v21 }
 0x17a   :  { %v41_v22 = vpop.xlane.xlu2 %40 }
 0x17b   :  { %v42_v23 = vrot.slane %v41_v22, 4 }
 0x17d   :  { %v43_v24 = vadd.f32 %v42_v23, %v41_v22 }
 0x17f   :  { %v44_v25 = vrot.slane %v43_v24, 2 }
 0x181   :  { %v45_v26 = vadd.f32 %v44_v25, %v43_v24 }
 0x183   :  { %v46_v27 = vrot.slane %v45_v26, 1 }
 0x185   :  { %v47_v28 = vadd.f32 %v46_v27, %v45_v26 }
 0x187   :  { %67 = vpush %v47_v28 }
 0x1b8   :  { %s68_s16 = spop %67 }
 0x1b9   :  { %v49_v29 = vstv %s68_s16 }
 0x1ba   :  { %50 = vst [vmem:[#allocation2] sm:$0xff] %v49_v29 }
 0x1bb   :  { %61 = dma.vmem_to_hbm [thread:$0]  %s57_s1, 128, %s59_s15, [#allocation3]  }
 0x1bc   :  { %101 = dma.done.wait [#allocation3], 128  }
 0x1bd   :  { %102 = vsyncadd [#allocation3], 4294967168 }
 0x1be   :  { %66 = vsyncpa [#allocation3], 1 }

</bundles_post_ra>
